<compile_context>
chip_gen: v6e
topology: v6e:2x2x1
jax: 0.10.0
libtpu: 0.0.40
codegen_flags: <defaults>
</compile_context>

<pallas_src>
import math

import jax
import jax.numpy as jnp
from jax.experimental import pallas as pl
from jax.experimental.pallas import tpu as pltpu

NUM_BITS = 8                                # config.activation_num_bits
NUM_BINS = float(2 ** NUM_BITS - 1)         # 255.0
INV_NUM_BINS = 1.0 / NUM_BINS

_MAX_BLOCK_ROWS = 4096                      # sanity cap on the row tile


# --------------------------------------------------------------------------- #
# Single-pass kernel: one (TN, D) block holds whole rows.
# --------------------------------------------------------------------------- #
def quant_measure_kernel(x_ref, o_ref):
    x = x_ref[...]
    if x.dtype != jnp.float32:
        x = x.astype(jnp.float32)

    mn = jnp.min(x, axis=-1, keepdims=True)          # (TN, 1) per-sample zero point
    mx = jnp.max(x, axis=-1, keepdims=True)
    r = mx - mn                                      # per-sample range
    # NOTE: like the PyTorch module, a constant row (r == 0) yields inf/NaN.
    scale = NUM_BINS * pl.reciprocal(r)              # exact reciprocal on the EUP

    # (x - mn) * scale >= 0 by construction, so only the upper clamp is needed.
    q = jnp.round(jnp.minimum((x - mn) * scale, NUM_BINS))
    # TODO(synk): stochastic=True path (uniform(-0.5, 0.5) noise via pltpu.prng_seed +
    # pltpu.prng_random_bits); the QuantMeasure default is stochastic=False.

    # Inverse transform: multiply by r/255 instead of dividing by scale.
    o_ref[...] = (q * (r * INV_NUM_BINS) + mn).astype(o_ref.dtype)


# --------------------------------------------------------------------------- #
# Two-pass fallback for rows too long for a single VMEM-resident block.
# --------------------------------------------------------------------------- #
def _make_minmax_kernel(D, td):
    needs_mask = (D % td) != 0

    def kernel(x_ref, mn_ref, mx_ref):
        j = pl.program_id(1)
        x = x_ref[...]
        if x.dtype != jnp.float32:
            x = x.astype(jnp.float32)
        if needs_mask:
            col = jax.lax.broadcasted_iota(jnp.int32, x.shape, 1) + j * td
            valid = col < D
            x_mn = jnp.where(valid, x, jnp.inf)
            x_mx = jnp.where(valid, x, -jnp.inf)
        else:
            x_mn = x
            x_mx = x

        @pl.when(j == 0)
        def _():
            mn_ref[...] = jnp.full(mn_ref.shape, jnp.inf, mn_ref.dtype)
            mx_ref[...] = jnp.full(mx_ref.shape, -jnp.inf, mx_ref.dtype)

        mn_ref[...] = jnp.minimum(mn_ref[...], jnp.min(x_mn, axis=-1, keepdims=True))
        mx_ref[...] = jnp.maximum(mx_ref[...], jnp.max(x_mx, axis=-1, keepdims=True))

    return kernel


def _quantize_tile_kernel(x_ref, mn_ref, mx_ref, o_ref):
    x = x_ref[...]
    if x.dtype != jnp.float32:
        x = x.astype(jnp.float32)
    mn = mn_ref[...]
    r = mx_ref[...] - mn
    scale = NUM_BINS * pl.reciprocal(r)
    q = jnp.round(jnp.minimum((x - mn) * scale, NUM_BINS))
    o_ref[...] = (q * (r * INV_NUM_BINS) + mn).astype(o_ref.dtype)


def _quant_measure_two_pass(x2, *, tn, td, vmem_limit, interpret):
    N, D = x2.shape
    n_row = (N + tn - 1) // tn
    n_col = (D + td - 1) // td

    # Pass 1: per-row min/max reduction over D tiles (accumulator resident across j).
    mn, mx = pl.pallas_call(
        _make_minmax_kernel(D, td),
        out_shape=(jax.ShapeDtypeStruct((N, 1), jnp.float32),
                   jax.ShapeDtypeStruct((N, 1), jnp.float32)),
        grid=(n_row, n_col),
        in_specs=[pl.BlockSpec((tn, td), lambda i, j: (i, j))],
        out_specs=(pl.BlockSpec((tn, 1), lambda i, j: (i, 0)),
                   pl.BlockSpec((tn, 1), lambda i, j: (i, 0))),
        compiler_params=pltpu.CompilerParams(
            dimension_semantics=("parallel", "arbitrary"),
            vmem_limit_bytes=int(vmem_limit)),
        interpret=interpret,
    )(x2)

    # Pass 2: quantize / dequantize each (tn, td) tile with its row's min/max.
    return pl.pallas_call(
        _quantize_tile_kernel,
        out_shape=jax.ShapeDtypeStruct((N, D), x2.dtype),
        grid=(n_row, n_col),
        in_specs=[pl.BlockSpec((tn, td), lambda i, j: (i, j)),
                  pl.BlockSpec((tn, 1), lambda i, j: (i, 0)),
                  pl.BlockSpec((tn, 1), lambda i, j: (i, 0))],
        out_specs=pl.BlockSpec((tn, td), lambda i, j: (i, j)),
        compiler_params=pltpu.CompilerParams(
            dimension_semantics=("parallel", "parallel"),
            vmem_limit_bytes=int(vmem_limit)),
        interpret=interpret,
    )(x2, mn, mx)


# --------------------------------------------------------------------------- #
# Wrapper
# --------------------------------------------------------------------------- #
def quant_measure(x, *, block_rows=None, interpret=False, _force_two_pass=False):
    """Forward of QuantMeasure for an N-leading float tensor (per-sample 8-bit quant)."""
    orig_shape = x.shape
    N = int(orig_shape[0])
    D = int(math.prod(orig_shape[1:])) if len(orig_shape) > 1 else 1
    x2 = x.reshape(N, D)
    itemsize = jnp.dtype(x.dtype).itemsize

    # ---- chip-aware VMEM budget (v7x: 64 MiB/core; v5e/v6e: 128 MiB).
    try:
        vmem_cap = int(pltpu.get_tpu_info().vmem_capacity_bytes)
    except Exception:
        vmem_cap = 64 * 1024 * 1024              # conservative: v7x per-core VMEM
    vmem_limit = max(32 * 1024 * 1024, min(vmem_cap * 3 // 4, 96 * 1024 * 1024))
    tile_budget = vmem_limit - (4 << 20)         # headroom for Mosaic internal scratch

    # Bytes per row of a (rows, D) block: 2x double-buffered in + out blocks (x.dtype)
    # plus ~3 block-sized f32 temporaries inside the kernel.  (No extra //2 — that
    # double-counted the double-buffering in the previous version.)
    per_row_bytes = D * (4 * itemsize + 3 * 4)

    # Sub-32-bit dtypes pack along sublanes; keep the row tile aligned to the pack factor.
    row_align = 8 * max(1, 4 // itemsize)

    fit_rows = int(tile_budget // per_row_bytes)
    min_rows = min(N, row_align)

    if _force_two_pass or fit_rows < min_rows:
        # Rows too long for a single VMEM-resident block -> two-pass D-tiled fallback.
        td = int(tile_budget // max(1, min_rows * (4 * itemsize + 3 * 4)))
        td = max(128, (td // 128) * 128)
        td = min(td, ((D + 127) // 128) * 128)
        if _force_two_pass:
            td = 128                              # keep the test-path tiles small
        out = _quant_measure_two_pass(x2, tn=min_rows, td=td,
                                      vmem_limit=vmem_limit, interpret=interpret)
        return out.reshape(orig_shape)

    # ---- single-pass path: each (TN, D) block holds whole rows; no padding needed.
    if block_rows is None:
        block_rows = fit_rows
    else:
        block_rows = max(min_rows, min(int(block_rows), fit_rows))  # keep within VMEM

    if block_rows >= N:
        TN = N                                    # block dim equal to the array dim is legal
    else:
        TN = max(row_align, (block_rows // row_align) * row_align)
    TN = min(TN, _MAX_BLOCK_ROWS)

    # Guarantee >= 2 grid steps for medium/large batches so the "parallel" row axis
    # can shard across both TensorCores on v7x.
    if TN >= N and N >= 2 * row_align:
        TN = ((N + 2 * row_align - 1) // (2 * row_align)) * row_align

    grid = ((N + TN - 1) // TN,)                  # edge block is masked by Pallas
    out = pl.pallas_call(
        quant_measure_kernel,
        out_shape=jax.ShapeDtypeStruct((N, D), x.dtype),
        grid=grid,
        in_specs=[pl.BlockSpec((TN, D), lambda i: (i, 0))],
        out_specs=pl.BlockSpec((TN, D), lambda i: (i, 0)),
        compiler_params=pltpu.CompilerParams(
            dimension_semantics=("parallel",),
            vmem_limit_bytes=int(vmem_limit)),
        interpret=interpret,
    )(x2)
    return out.reshape(orig_shape)


def quant_measure_ref(x):
    # Pure-JAX reference of the same math (same formulation as the kernel).
    N = x.shape[0]
    x2 = x.reshape(N, -1).astype(jnp.float32)
    mn = jnp.min(x2, axis=-1, keepdims=True)
    mx = jnp.max(x2, axis=-1, keepdims=True)
    r = mx - mn
    scale = NUM_BINS * (1.0 / r)
    q = jnp.round(jnp.clip((x2 - mn) * scale, 0.0, NUM_BINS))
    out = q * (r * INV_NUM_BINS) + mn
    return out.astype(x.dtype).reshape(x.shape)


if __name__ == "__main__":
    key = jax.random.PRNGKey(0)
    k1, k2, k3, k4 = jax.random.split(key, 4)

    def check(y, y_ref, x):
        assert y.shape == x.shape and y.dtype == x.dtype
        assert jnp.allclose(y, y_ref, atol=1e-5, rtol=1e-5), \
            f"max err {float(jnp.max(jnp.abs(y - y_ref)))}"

    # 1) NCHW activation, lane-aligned D = 4*16*16 = 1024, tiny batch -> single block.
    x = jax.random.normal(k1, (2, 4, 16, 16), dtype=jnp.float32)
    y = jax.block_until_ready(quant_measure(x))
    check(y, quant_measure_ref(x), x)

    # 2) Non-128-multiple feature dim (D = 3*5*7 = 105): full-D block, no wrapper padding.
    x_odd = jax.random.normal(k2, (2, 3, 5, 7), dtype=jnp.float32)
    y_odd = jax.block_until_ready(quant_measure(x_odd))
    check(y_odd, quant_measure_ref(x_odd), x_odd)

    # 3) N = 20 (not a multiple of the row tile): >= 2 grid steps + masked edge row block.
    x_rows = jax.random.normal(k3, (20, 4, 8, 8), dtype=jnp.float32)
    y_rows = jax.block_until_ready(quant_measure(x_rows))
    check(y_rows, quant_measure_ref(x_rows), x_rows)

    # 4) Forced two-pass (D-tiled) fallback path, with a masked last column tile (D = 300).
    x_big = jax.random.normal(k4, (16, 3, 10, 10), dtype=jnp.float32)
    y_big = jax.block_until_ready(quant_measure(x_big, _force_two_pass=True))
    check(y_big, quant_measure_ref(x_big), x_big)

    print("KERNEL_OK")
</pallas_src>

<mosaic_0001>
module attributes {stable_mosaic.version = 11 : i64} {
  func.func @quant_measure_kernel(%arg0: i32, %arg1: memref<2x1024xf32, #tpu.memory_space<vmem>>, %arg2: memref<2x1024xf32, #tpu.memory_space<vmem>>) attributes {dimension_semantics = [#tpu.dimension_semantics<parallel>], iteration_bounds = array<i64: 1>, scalar_prefetch = 0 : i64, scratch_operands = 0 : i64, tpu.core_type = #tpu.core_type<tc>, window_params = [{transform_indices = @transform_0, window_bounds = array<i64: 2, 1024>}, {transform_indices = @transform_1, window_bounds = array<i64: 2, 1024>}]} {
    %c0 = arith.constant 0 : index
    %c0_0 = arith.constant 0 : index
    %0 = vector.load %arg1[%c0, %c0_0] : memref<2x1024xf32, #tpu.memory_space<vmem>>, vector<2x1024xf32>
    %cst = arith.constant dense<0x7F800000> : vector<2xf32>
    %1 = vector.multi_reduction <minimumf>, %0, %cst [1] : vector<2x1024xf32> to vector<2xf32>
    %2 = vector.shape_cast %1 : vector<2xf32> to vector<2x1xf32>
    %cst_1 = arith.constant dense<0xFF800000> : vector<2xf32>
    %3 = vector.multi_reduction <maximumf>, %0, %cst_1 [1] : vector<2x1024xf32> to vector<2xf32>
    %4 = vector.shape_cast %3 : vector<2xf32> to vector<2x1xf32>
    %5 = arith.subf %4, %2 : vector<2x1xf32>
    %6 = tpu.reciprocal %5 : vector<2x1xf32> -> vector<2x1xf32>
    %cst_2 = arith.constant 2.550000e+02 : f32
    %7 = vector.broadcast %cst_2 : f32 to vector<2x1xf32>
    %8 = arith.mulf %7, %6 : vector<2x1xf32>
    %9 = vector.broadcast %2 : vector<2x1xf32> to vector<2x1024xf32>
    %10 = arith.subf %0, %9 : vector<2x1024xf32>
    %11 = vector.broadcast %8 : vector<2x1xf32> to vector<2x1024xf32>
    %12 = arith.mulf %10, %11 : vector<2x1024xf32>
    %cst_3 = arith.constant 2.550000e+02 : f32
    %13 = vector.broadcast %cst_3 : f32 to vector<2x1024xf32>
    %14 = arith.minimumf %12, %13 : vector<2x1024xf32>
    %15 = math.roundeven %14 : vector<2x1024xf32>
    %cst_4 = arith.constant 0.00392156886 : f32
    %16 = vector.broadcast %cst_4 : f32 to vector<2x1xf32>
    %17 = arith.mulf %5, %16 : vector<2x1xf32>
    %18 = vector.broadcast %17 : vector<2x1xf32> to vector<2x1024xf32>
    %19 = arith.mulf %15, %18 : vector<2x1024xf32>
    %20 = vector.broadcast %2 : vector<2x1xf32> to vector<2x1024xf32>
    %21 = arith.addf %19, %20 : vector<2x1024xf32>
    %c0_5 = arith.constant 0 : index
    %c0_6 = arith.constant 0 : index
    %22 = vector.load %arg2[%c0_5, %c0_6] : memref<2x1024xf32, #tpu.memory_space<vmem>>, vector<2x1024xf32>
    tpu.vector_store %arg2[%c0_5, %c0_6], %21 {strides = array<i32>} : memref<2x1024xf32, #tpu.memory_space<vmem>>, vector<2x1024xf32>,
    return
  }
  func.func @transform_0(%arg0: i32) -> (i32, i32) {
    %c0_i32 = arith.constant 0 : i32
    %c0_i32_0 = arith.constant 0 : i32
    return %arg0, %c0_i32 : i32, i32
  }
  func.func @transform_1(%arg0: i32) -> (i32, i32) {
    %c0_i32 = arith.constant 0 : i32
    %c0_i32_0 = arith.constant 0 : i32
    return %arg0, %c0_i32 : i32, i32
  }
}

</mosaic_0001>

<bundles_post_ra>
// kernel: tpu_custom_call.1
= control target key start
LH: loop header
LB: loop body
LE: loop exit
PB: predicated region body
PF: predicated region fallthrough
CT: control target
= control target key end

     0   :  { %6 = vsyncpa [#allocation3], 0  ;;  %s266_s0 = inlined_call_operand.hbm [shape: f32[2,1024], index: 0, kind: input, shape index: {}]   ;;  %s267_s1 = inlined_call_operand.hbm [shape: f32[2,1024], index: 1, kind: output, shape index: {}]  }
   0x1   :  { %7 = vsyncpa [#allocation4], 0  ;;  %s230_s6 = smov [#allocation2]  }
   0x2   :  { %s14_s7 = sshll.u32 %s230_s6, 4  ;;  %s15_s7 = int_to_ptr.vmem [resolvable:$true] %s14_s7 }
   0x3   :  { %s194_s8 = scalar_lea.vmem %s15_s7, 256  ;;  %p199_p1 = scmp.lt.s32.totalorder %s15_s7, %s15_s7 }
   0x4   :  { %p195_p0 = scmp.ne.s32.totalorder %s15_s7, %s194_s8  ;;  %p200_p2 = scmp.lt.s32.totalorder %s194_s8, %s194_s8 }
   0x6   :  { %p201_p3 = por %p200_p2, %p199_p1 }
   0x8   :  { %p202_p4 = pnand %p201_p3, %p195_p0 }
   0xa   :  { %205 = shalt.err (!%p202_p4)
}
   0xb   :  { %17 = dma.hbm_to_vmem [thread:$0]  %s266_s0, 256, %s15_s7, [#allocation3]  }
   0xc   :  { %226 = dma.done.wait [#allocation3], 256  }
   0xd   :  { %227 = vsyncadd [#allocation3], 4294967040  ;;  %v29_v0 = vlaneseq  ;;  %v231_v1 = vmov 1983009808   ;;  %v21_v6 = vld [vmem:[#allocation2] sm:$0xff]  ;;  %v22_v7 = vld [vmem:[#allocation2 + $0x8] sm:$0xff] }
   0xe   :  { %v27_v2 = vunpack.c.l.s4 %v231_v1  ;;  %vm67_vm0 = vcmask 1041408   ;;  %v25_v8 = vcombine.high %v21_v6, %v21_v6  ;;  %v42_v10 = vcombine.high %v22_v7, %v22_v7  ;;  %s233_s0 = smov [#allocation5]  }
   0xf   :  { %v30_v3 = vshrl.u32 %v29_v0, 7  ;;  %v232_v51 = vmov 269488144   ;;  %s153_s11 = sshll.u32 %s233_s0, 4  ;;  %s154_s11 = int_to_ptr.vmem [resolvable:$true] %s153_s11 }
  0x10   :  { %v28_v4 = vunpack.c.0.s8 %v27_v2  ;;  %v107_v52 = vunpack.c.l.s4 %v232_v51  ;;  %s206_s12 = scalar_lea.vmem %s154_s11, 256  ;;  %p211_p6 = scmp.lt.s32.totalorder %s154_s11, %s154_s11 }
  0x11   :  { %p207_p5 = scmp.ne.s32.totalorder %s154_s11, %s206_s12  ;;  %p212_p7 = scmp.lt.s32.totalorder %s206_s12, %s206_s12 }
  0x12   :  { %v31_v5 = vsub.s32 %v28_v4, %v30_v3  ;;  %v108_v53 = vunpack.c.0.s8 %v107_v52 }
  0x13   :  { %p213_p8 = por %p212_p7, %p211_p6 }
  0x14   :  { %v32_v9 = vrot.slane %v21_v6, %v31_v5  ;;  %v49_v11 = vrot.slane %v22_v7, %v31_v5  ;;  %v39_v12 = vrot.slane %v25_v8, %v31_v5  ;;  %v56_v14 = vrot.slane %v42_v10, %v31_v5 }
  0x15   :  { %v111_v54 = vsub.s32 %v108_v53, %v30_v3  ;;  %p214_p9 = pnand %p213_p8, %p207_p5 }
  0x16   :  { %v40_v13 = vcombine.high %v32_v9, %v32_v9  ;;  %v57_v15 = vcombine.high %v49_v11, %v49_v11  ;;  %v68_v16 = vsel %vm67_vm0, %v32_v9, inf  ;;  %v72_v17 = vsel %vm67_vm0, %v49_v11, inf }
  0x17   :  { %v85_v18 = vsel %vm67_vm0, %v32_v9, -inf  ;;  %v89_v19 = vsel %vm67_vm0, %v49_v11, -inf  ;;  %v41_v20 = vcombine.high %v39_v12, %v39_v12  ;;  %v58_v21 = vcombine.high %v56_v14, %v56_v14 }
  0x18   :  { %v69_v22 = vsel %vm67_vm0, %v40_v13, inf  ;;  %v70_v23 = vsel %vm67_vm0, %v39_v12, inf  ;;  %v73_v24 = vmin.f32 %v68_v16, %v72_v17  ;;  %v74_v25 = vsel %vm67_vm0, %v57_v15, inf }
  0x19   :  { %v76_v26 = vsel %vm67_vm0, %v56_v14, inf  ;;  %v86_v27 = vsel %vm67_vm0, %v40_v13, -inf  ;;  %v71_v28 = vsel %vm67_vm0, %v41_v20, inf  ;;  %v75_v29 = vmin.f32 %v69_v22, %v74_v25 }
  0x1a   :  { %v77_v30 = vmin.f32 %v70_v23, %v76_v26  ;;  %v78_v31 = vsel %vm67_vm0, %v58_v21, inf  ;;  %v87_v33 = vsel %vm67_vm0, %v39_v12, -inf  ;;  %v88_v34 = vsel %vm67_vm0, %v41_v20, -inf }
  0x1b   :  { %v79_v32 = vmin.f32 %v71_v28, %v78_v31  ;;  %v90_v35 = vmax.f32 %v85_v18, %v89_v19  ;;  %v80_v36 = vmin.f32 %v73_v24, %v75_v29  ;;  %v91_v37 = vsel %vm67_vm0, %v57_v15, -inf }
  0x1c   :  { %v93_v38 = vsel %vm67_vm0, %v56_v14, -inf  ;;  %v95_v39 = vsel %vm67_vm0, %v58_v21, -inf  ;;  %v92_v41 = vmax.f32 %v86_v27, %v91_v37 }
  0x1d   :  { %v81_v40 = vmin.f32 %v77_v30, %v79_v32  ;;  %v94_v42 = vmax.f32 %v87_v33, %v93_v38  ;;  %v96_v43 = vmax.f32 %v88_v34, %v95_v39 }
  0x1e   :  { %v97_v45 = vmax.f32 %v90_v35, %v92_v41 }
  0x1f   :  { %v82_v44 = vmin.f32 %v80_v36, %v81_v40  ;;  %v98_v46 = vmax.f32 %v94_v42, %v96_v43 }
  0x21   :  { %83 = vmin.xlane.f32.xlu0 %v82_v44  ;;  %v99_v47 = vmax.f32 %v97_v45, %v98_v46 }
  0x25   :  { %100 = vmax.xlane.f32.xlu0 %v99_v47 }
  0xaa   :  { %v84_v48 = vpop.xlane.xlu0 %83 }
  0xab   :  { %v112_v55 = vrot.slane %v84_v48, %v111_v54 }
  0xad   :  { %v114_v58 = vsub.f32 %v21_v6, %v112_v55  ;;  %v115_v59 = vsub.f32 %v22_v7, %v112_v55 }
  0xae   :  { %v101_v49 = vpop.xlane.xlu0 %100 }
  0xaf   :  { %v102_v50 = vsub.f32 %v101_v49, %v84_v48 }
  0xb1   :  { %184 = vrcp.f32 %v102_v50  ;;  %v131_v9 = vmul.f32 0.003921569, %v102_v50 }
  0xb3   :  { %v139_v7 = vrot.slane %v131_v9, %v111_v54 }
  0xbe   :  { %v185_v56 = vpop.eup %184 }
  0xbf   :  { %v104_v57 = vmul.f32 255.0, %v185_v56 }
  0xc1   :  { %v123_v60 = vrot.slane %v104_v57, %v111_v54 }
  0xc3   :  { %v125_v61 = vmul.f32 %v123_v60, %v114_v58  ;;  %v126_v62 = vmul.f32 %v123_v60, %v115_v59 }
  0xc5   :  { %v127_v63 = vmin.f32 %v125_v61, 255.0  ;;  %v128_v0 = vmin.f32 %v126_v62, 255.0 }
  0xc7   :  { %v164_v1 = vcvt.f32.s32 %v127_v63  ;;  %v172_v2 = vcvt.f32.s32 %v128_v0  ;;  %v162_v5 = vand.u32 2147483647, %v127_v63  ;;  %v167_v11 = vand.u32 2147483648, %v127_v63 }
  0xc8   :  { %v170_v12 = vand.u32 2147483647, %v128_v0  ;;  %v175_v13 = vand.u32 2147483648, %v128_v0 }
  0xc9   :  { %v165_v4 = vcvt.s32.f32 %v164_v1  ;;  %v173_v8 = vcvt.s32.f32 %v172_v2  ;;  %vm163_vm1 = vcmp.lt.f32.partialorder %v162_v5, 8388608.0 }
  0xca   :  { %vm171_vm2 = vcmp.lt.f32.partialorder %v170_v12, 8388608.0 }
  0xcb   :  { %v166_v10 = vand.u32 2147483647, %v165_v4  ;;  %v174_v3 = vand.u32 2147483647, %v173_v8 }
  0xcd   :  { %v168_v14 = vor.u32 %v167_v11, %v166_v10  ;;  %v176_v6 = vor.u32 %v175_v13, %v174_v3 }
  0xcf   :  { %v169_v15 = vsel %vm163_vm1, %v168_v14, %v127_v63  ;;  %v177_v16 = vsel %vm171_vm2, %v176_v6, %v128_v0 }
  0xd0   :  { %v141_v17 = vmul.f32 %v169_v15, %v139_v7  ;;  %v142_v18 = vmul.f32 %v177_v16, %v139_v7 }
  0xd2   :  { %v143_v19 = vadd.f32 %v141_v17, %v112_v55  ;;  %v144_v20 = vadd.f32 %v142_v18, %v112_v55 }
  0xd4   :  { %145 = vst [vmem:[#allocation5] sm:$0xff] %v143_v19  ;;  %146 = vst [vmem:[#allocation5 + $0x8] sm:$0xff] %v144_v20 }
  0xd5   :  { %217 = shalt.err (!%p214_p9)
}
  0xd6   :  { %156 = dma.vmem_to_hbm [thread:$0]  %s154_s11, 256, %s267_s1, [#allocation4]  }
  0xd7   :  { %228 = dma.done.wait [#allocation4], 256  }
  0xd8   :  { %229 = vsyncadd [#allocation4], 4294967040 }
  0xd9   :  { %160 = vsyncpa [#allocation3], 1 }
  0xda   :  { %161 = vsyncpa [#allocation4], 1 }

</bundles_post_ra>
